<compile_context>
chip_gen: v5e
topology: v5e:2x2
jax: 0.10.0
libtpu: 0.0.40
codegen_flags: <defaults>
</compile_context>

<pallas_src>
import functools

import numpy as np

import jax
import jax.numpy as jnp
from jax.experimental import pallas as pl
from jax.experimental.pallas import tpu as pltpu

_LANES = 128  # lane width; all hidden/output dims must fit in one lane tile


def _fused_mlp_kernel(x_ref, w0_ref, slab_ref, o_ref, *, dims, w_row_offs,
                      bias_rows):
    """Fused MLP body.

    x_ref    : [B, D0]      f32  (flattened input)
    w0_ref   : [D0, D1]     f32  (first-layer weight, kept as its own block)
    slab_ref : [R, 128]     f32  (all remaining weights + all biases, packed)
    o_ref    : [B, Dout]    f32

    Chains  h = relu(h @ W_i + b_i)  for i < N and  o = h @ W_N + b_N,
    keeping every intermediate in VMEM/vregs (never HBM).  All slab slices
    are static Python slices.
    """
    n_layers = len(dims)
    h = x_ref[...]                                   # [B, D0] f32
    for li in range(n_layers):
        din, dout = dims[li]
        if li == 0:
            w = w0_ref[...]                          # [D0, D1]
        else:
            r0 = w_row_offs[li]
            w = slab_ref[r0:r0 + din, 0:dout]        # [din, dout]
        b = slab_ref[bias_rows[li]:bias_rows[li] + 1, 0:dout]   # [1, dout]
        h = jnp.dot(h, w, preferred_element_type=jnp.float32) + b
        if li < n_layers - 1:
            h = jnp.maximum(h, 0.0)                  # ReLU on hidden layers only
    o_ref[...] = h.astype(o_ref.dtype)


def fused_mlp_pallas(x_flat, w0, slab, dims, w_row_offs, bias_rows):
    """Single grid-less pallas_call for the whole MLP.  x_flat: [B, D0] f32."""
    B = x_flat.shape[0]
    out_dim = dims[-1][1]

    kernel = functools.partial(
        _fused_mlp_kernel,
        dims=dims,
        w_row_offs=w_row_offs,
        bias_rows=bias_rows,
    )
    vmem_spec = pl.BlockSpec(memory_space=pltpu.MemorySpace.VMEM)

    return pl.pallas_call(
        kernel,
        out_shape=jax.ShapeDtypeStruct((B, out_dim), x_flat.dtype),
        in_specs=[vmem_spec, vmem_spec, vmem_spec],
        out_specs=vmem_spec,
    )(x_flat, w0, slab)


def init_params(key, input_dim, output_dim, hidden_layers):
    """Deterministic init mimicking nn.Linear's U(-1/sqrt(in), 1/sqrt(in)).

    Weights stored pre-transposed [in, out], everything f32 (latency-bound
    kernel: bf16 bought nothing and cost accuracy).
    """
    dims = [input_dim] + list(hidden_layers) + [output_dim]
    params = []
    for i in range(len(dims) - 1):
        in_dim, out_dim = dims[i], dims[i + 1]
        key, kw, kb = jax.random.split(key, 3)
        bound = float(in_dim) ** -0.5
        w_t = jax.random.uniform(kw, (in_dim, out_dim), jnp.float32, -bound, bound)
        b = jax.random.uniform(kb, (out_dim,), jnp.float32, -bound, bound)
        params.append((w_t, b))
    return params


def pack_params(params):
    """Pack all weights except W0, plus all biases, into one lane-dense slab.

    Slab layout (f32, width 128, host-built with numpy):
      rows [w_row_offs[i] : w_row_offs[i]+in_i), cols [0:out_i)  -> W_i (i>=1)
      row  bias_rows[i],                          cols [0:out_i) -> b_i (all i)
    Row offsets are 8-aligned; total rows padded to a multiple of 8.
    Returns (W0, slab, dims, w_row_offs, bias_rows) — the last three are
    static Python tuples baked into the kernel.
    """
    n = len(params)
    dims = tuple((int(w.shape[0]), int(w.shape[1])) for w, _ in params)
    assert all(dout <= _LANES for _, dout in dims), "packing assumes out dims <= 128"

    w_row_offs = [0] * n
    rows = 0
    for li in range(1, n):
        din, _ = dims[li]
        w_row_offs[li] = rows
        rows += din
        rows += (-rows) % 8                       # keep blocks sublane-aligned
    bias_rows = []
    for li in range(n):
        bias_rows.append(rows)
        rows += 1
    rows += (-rows) % 8                           # pad total rows to multiple of 8

    slab = np.zeros((rows, _LANES), np.float32)
    for li in range(1, n):
        din, dout = dims[li]
        slab[w_row_offs[li]:w_row_offs[li] + din, :dout] = np.asarray(params[li][0])
    for li in range(n):
        dout = dims[li][1]
        slab[bias_rows[li], :dout] = np.asarray(params[li][1])

    return params[0][0], jnp.asarray(slab), dims, tuple(w_row_offs), tuple(bias_rows)


@functools.partial(jax.jit, static_argnums=(3, 4, 5))
def logistic_regression_forward(x_nchw, w0, slab, dims, w_row_offs, bias_rows):
    # Flatten exactly like torch: x.view(x.size(0), -1)  (row-major over C,H,W)
    B = x_nchw.shape[0]
    x = x_nchw.reshape(B, -1)
    # NOTE: arbitrary B is supported; batch requests to B~128-256 per call for
    # throughput — this call is latency-bound, extra rows are ~free.
    return fused_mlp_pallas(x, w0, slab, dims, w_row_offs, bias_rows)


if __name__ == "__main__":
    # Small, module-consistent shapes.
    B, C, H, W = 2, 4, 16, 16
    input_dim = C * H * W          # 1024 (flattened)
    hidden_layers = [32, 32]
    output_dim = 8
    dropout_rate = 0.0             # -> no Dropout layers, matching PyTorch ctor
    assert dropout_rate == 0.0, "non-zero dropout in training mode not implemented"

    key = jax.random.PRNGKey(0)
    key, kx = jax.random.split(key)
    x = jax.random.normal(kx, (B, C, H, W), dtype=jnp.float32)

    params = init_params(key, input_dim, output_dim, hidden_layers)
    w0, slab, dims, w_row_offs, bias_rows = pack_params(params)

    out = logistic_regression_forward(x, w0, slab, dims, w_row_offs, bias_rows)
    out = jax.block_until_ready(out)

    # Plain-JAX f32 reference (same math, unpacked params).
    ref = x.reshape(B, -1)
    for li, (w_t, b) in enumerate(params):
        ref = ref @ w_t + b
        if li < len(params) - 1:
            ref = jnp.maximum(ref, 0.0)

    assert out.shape == (B, output_dim), out.shape
    assert bool(jnp.all(jnp.isfinite(out)))
    assert bool(jnp.allclose(out, ref, atol=2e-2, rtol=2e-2)), (
        float(jnp.max(jnp.abs(out - ref))))
    print("KERNEL_OK")
</pallas_src>

<mosaic_0001>
module attributes {stable_mosaic.version = 11 : i64} {
  func.func @_fused_mlp_kernel(%arg0: memref<2x1024xf32, #tpu.memory_space<vmem>>, %arg1: memref<1024x32xf32, #tpu.memory_space<vmem>>, %arg2: memref<72x128xf32, #tpu.memory_space<vmem>>, %arg3: memref<2x8xf32, #tpu.memory_space<vmem>>) attributes {dimension_semantics = [], scalar_prefetch = 0 : i64, scratch_operands = 0 : i64, tpu.core_type = #tpu.core_type<tc>} {
    %c0 = arith.constant 0 : index
    %c0_0 = arith.constant 0 : index
    %0 = vector.load %arg0[%c0, %c0_0] : memref<2x1024xf32, #tpu.memory_space<vmem>>, vector<2x1024xf32>
    %c0_1 = arith.constant 0 : index
    %c0_2 = arith.constant 0 : index
    %1 = vector.load %arg1[%c0_1, %c0_2] : memref<1024x32xf32, #tpu.memory_space<vmem>>, vector<1024x32xf32>
    %c64 = arith.constant 64 : index
    %c0_3 = arith.constant 0 : index
    %2 = vector.load %arg2[%c64, %c0_3] : memref<72x128xf32, #tpu.memory_space<vmem>>, vector<1x32xf32>
    %cst = arith.constant dense<0.000000e+00> : vector<2x32xf32>
    %3 = tpu.matmul %0, %1, %cst {dimension_numbers = #tpu.dot_dimension_numbers<[1], [0], [0], [1], [0, 0, 1, 1], [], []>} : vector<2x1024xf32>, vector<1024x32xf32>, vector<2x32xf32> -> vector<2x32xf32>
    %4 = vector.broadcast %2 : vector<1x32xf32> to vector<2x32xf32>
    %5 = arith.addf %3, %4 : vector<2x32xf32>
    %cst_4 = arith.constant 0.000000e+00 : f32
    %6 = vector.broadcast %cst_4 : f32 to vector<2x32xf32>
    %7 = arith.maximumf %5, %6 : vector<2x32xf32>
    %c0_5 = arith.constant 0 : index
    %c0_6 = arith.constant 0 : index
    %8 = vector.load %arg2[%c0_5, %c0_6] : memref<72x128xf32, #tpu.memory_space<vmem>>, vector<32x32xf32>
    %c65 = arith.constant 65 : index
    %c0_7 = arith.constant 0 : index
    %9 = vector.load %arg2[%c65, %c0_7] : memref<72x128xf32, #tpu.memory_space<vmem>>, vector<1x32xf32>
    %cst_8 = arith.constant dense<0.000000e+00> : vector<2x32xf32>
    %10 = tpu.matmul %7, %8, %cst_8 {dimension_numbers = #tpu.dot_dimension_numbers<[1], [0], [0], [1], [0, 0, 1, 1], [], []>} : vector<2x32xf32>, vector<32x32xf32>, vector<2x32xf32> -> vector<2x32xf32>
    %11 = vector.broadcast %9 : vector<1x32xf32> to vector<2x32xf32>
    %12 = arith.addf %10, %11 : vector<2x32xf32>
    %cst_9 = arith.constant 0.000000e+00 : f32
    %13 = vector.broadcast %cst_9 : f32 to vector<2x32xf32>
    %14 = arith.maximumf %12, %13 : vector<2x32xf32>
    %c32 = arith.constant 32 : index
    %c0_10 = arith.constant 0 : index
    %15 = vector.load %arg2[%c32, %c0_10] : memref<72x128xf32, #tpu.memory_space<vmem>>, vector<32x8xf32>
    %c66 = arith.constant 66 : index
    %c0_11 = arith.constant 0 : index
    %16 = vector.load %arg2[%c66, %c0_11] : memref<72x128xf32, #tpu.memory_space<vmem>>, vector<1x8xf32>
    %cst_12 = arith.constant dense<0.000000e+00> : vector<2x8xf32>
    %17 = tpu.matmul %14, %15, %cst_12 {dimension_numbers = #tpu.dot_dimension_numbers<[1], [0], [0], [1], [0, 0, 1, 1], [], []>} : vector<2x32xf32>, vector<32x8xf32>, vector<2x8xf32> -> vector<2x8xf32>
    %18 = vector.broadcast %16 : vector<1x8xf32> to vector<2x8xf32>
    %19 = arith.addf %17, %18 : vector<2x8xf32>
    %c0_13 = arith.constant 0 : index
    %c0_14 = arith.constant 0 : index
    %20 = vector.load %arg3[%c0_13, %c0_14] : memref<2x8xf32, #tpu.memory_space<vmem>>, vector<2x8xf32>
    tpu.vector_store %arg3[%c0_13, %c0_14], %19 {strides = array<i32>} : memref<2x8xf32, #tpu.memory_space<vmem>>, vector<2x8xf32>,
    return
  }
}

</mosaic_0001>

<bundles_post_ra>
// kernel: logistic_regression_forward.1
= control target key start
LH: loop header
LB: loop body
LE: loop exit
PB: predicated region body
PF: predicated region fallthrough
CT: control target
= control target key end

     0   :  { %s886_s0 = inlined_call_operand.vmem [shape: f32[2,1024], index: 0, kind: input, shape index: {}]   ;;  %s887_s1 = inlined_call_operand.vmem [shape: f32[1024,32], index: 1, kind: input, shape index: {}]   ;;  %s888_s2 = inlined_call_operand.vmem [shape: f32[72,128], index: 2, kind: input, shape index: {}]   ;;  %s889_s3 = inlined_call_operand.hbm [shape: f32[2,8], index: 3, kind: output, shape index: {}]  }
   0x1   :  { %v64_v0 = vld [vmem:[%s887_s1 + $0x178] sm:$0xff]  ;;  %v63_v2 = vld [vmem:[%s887_s1 + $0x170] sm:$0xff]  ;;  %v62_v6 = vld [vmem:[%s887_s1 + $0x168] sm:$0xff] }
   0x2   :  { %v32_v1 = vld [vmem:[%s887_s1 + $0x78] sm:$0xff]  ;;  %208 = vmatpush.msra.mxu2 %v64_v0  ;;  %v31_v4 = vld [vmem:[%s887_s1 + $0x70] sm:$0xff]  ;;  %v30_v8 = vld [vmem:[%s887_s1 + $0x68] sm:$0xff] }
   0x3   :  { %168 = vmatpush.msra.mxu0 %v32_v1  ;;  %v80_v3 = vld [vmem:[%s887_s1 + $0x1f8] sm:$0xff]  ;;  %v79_v7 = vld [vmem:[%s887_s1 + $0x1f0] sm:$0xff]  ;;  %v78_v10 = vld [vmem:[%s887_s1 + $0x1e8] sm:$0xff] }
   0x4   :  { %v48_v5 = vld [vmem:[%s887_s1 + $0xf8] sm:$0xff]  ;;  %228 = vmatpush.msra.mxu3 %v80_v3  ;;  %209 = vmatpush.msra.mxu2 %v63_v2  ;;  %v47_v9 = vld [vmem:[%s887_s1 + $0xf0] sm:$0xff]  ;;  %v61_v11 = vld [vmem:[%s887_s1 + $0x160] sm:$0xff] }
   0x5   :  { %188 = vmatpush.msra.mxu1 %v48_v5  ;;  %169 = vmatpush.msra.mxu0 %v31_v4  ;;  %v29_v12 = vld [vmem:[%s887_s1 + $0x60] sm:$0xff]  ;;  %v46_v13 = vld [vmem:[%s887_s1 + $0xe8] sm:$0xff]  ;;  %v60_v16 = vld [vmem:[%s887_s1 + $0x158] sm:$0xff] }
   0x6   :  { %229 = vmatpush.msra.mxu3 %v79_v7  ;;  %210 = vmatpush.msra.mxu2 %v62_v6  ;;  %v77_v14 = vld [vmem:[%s887_s1 + $0x1e0] sm:$0xff]  ;;  %v28_v17 = vld [vmem:[%s887_s1 + $0x58] sm:$0xff]  ;;  %v59_v20 = vld [vmem:[%s887_s1 + $0x150] sm:$0xff] }
   0x7   :  { %189 = vmatpush.msra.mxu1 %v47_v9  ;;  %170 = vmatpush.msra.mxu0 %v30_v8  ;;  %v45_v15 = vld [vmem:[%s887_s1 + $0xe0] sm:$0xff]  ;;  %v76_v18 = vld [vmem:[%s887_s1 + $0x1d8] sm:$0xff]  ;;  %v27_v21 = vld [vmem:[%s887_s1 + $0x50] sm:$0xff] }
   0x8   :  { %230 = vmatpush.msra.mxu3 %v78_v10  ;;  %211 = vmatpush.msra.mxu2 %v61_v11  ;;  %v44_v19 = vld [vmem:[%s887_s1 + $0xd8] sm:$0xff]  ;;  %v75_v22 = vld [vmem:[%s887_s1 + $0x1d0] sm:$0xff]  ;;  %v58_v24 = vld [vmem:[%s887_s1 + $0x148] sm:$0xff] }
   0x9   :  { %190 = vmatpush.msra.mxu1 %v46_v13  ;;  %171 = vmatpush.msra.mxu0 %v29_v12  ;;  %v43_v23 = vld [vmem:[%s887_s1 + $0xd0] sm:$0xff]  ;;  %v26_v25 = vld [vmem:[%s887_s1 + $0x48] sm:$0xff]  ;;  %v57_v28 = vld [vmem:[%s887_s1 + $0x140] sm:$0xff] }
   0xa   :  { %231 = vmatpush.msra.mxu3 %v77_v14  ;;  %212 = vmatpush.msra.mxu2 %v60_v16  ;;  %v74_v26 = vld [vmem:[%s887_s1 + $0x1c8] sm:$0xff]  ;;  %v25_v29 = vld [vmem:[%s887_s1 + $0x40] sm:$0xff]  ;;  %v56_v32 = vld [vmem:[%s887_s1 + $0x138] sm:$0xff] }
   0xb   :  { %191 = vmatpush.msra.mxu1 %v45_v15  ;;  %172 = vmatpush.msra.mxu0 %v28_v17  ;;  %v42_v27 = vld [vmem:[%s887_s1 + $0xc8] sm:$0xff]  ;;  %v73_v30 = vld [vmem:[%s887_s1 + $0x1c0] sm:$0xff]  ;;  %v24_v33 = vld [vmem:[%s887_s1 + $0x38] sm:$0xff] }
   0xc   :  { %232 = vmatpush.msra.mxu3 %v76_v18  ;;  %213 = vmatpush.msra.mxu2 %v59_v20  ;;  %v41_v31 = vld [vmem:[%s887_s1 + $0xc0] sm:$0xff]  ;;  %v72_v34 = vld [vmem:[%s887_s1 + $0x1b8] sm:$0xff]  ;;  %v55_v36 = vld [vmem:[%s887_s1 + $0x130] sm:$0xff] }
   0xd   :  { %192 = vmatpush.msra.mxu1 %v44_v19  ;;  %173 = vmatpush.msra.mxu0 %v27_v21  ;;  %v40_v35 = vld [vmem:[%s887_s1 + $0xb8] sm:$0xff]  ;;  %v23_v37 = vld [vmem:[%s887_s1 + $0x30] sm:$0xff]  ;;  %v54_v40 = vld [vmem:[%s887_s1 + $0x128] sm:$0xff] }
   0xe   :  { %233 = vmatpush.msra.mxu3 %v75_v22  ;;  %214 = vmatpush.msra.mxu2 %v58_v24  ;;  %v71_v38 = vld [vmem:[%s887_s1 + $0x1b0] sm:$0xff]  ;;  %v22_v41 = vld [vmem:[%s887_s1 + $0x28] sm:$0xff]  ;;  %v53_v44 = vld [vmem:[%s887_s1 + $0x120] sm:$0xff] }
   0xf   :  { %193 = vmatpush.msra.mxu1 %v43_v23  ;;  %174 = vmatpush.msra.mxu0 %v26_v25  ;;  %v39_v39 = vld [vmem:[%s887_s1 + $0xb0] sm:$0xff]  ;;  %v70_v42 = vld [vmem:[%s887_s1 + $0x1a8] sm:$0xff]  ;;  %v21_v45 = vld [vmem:[%s887_s1 + $0x20] sm:$0xff] }
  0x10   :  { %234 = vmatpush.msra.mxu3 %v74_v26  ;;  %215 = vmatpush.msra.mxu2 %v57_v28  ;;  %v38_v43 = vld [vmem:[%s887_s1 + $0xa8] sm:$0xff]  ;;  %v69_v46 = vld [vmem:[%s887_s1 + $0x1a0] sm:$0xff]  ;;  %v52_v48 = vld [vmem:[%s887_s1 + $0x118] sm:$0xff] }
  0x11   :  { %194 = vmatpush.msra.mxu1 %v42_v27  ;;  %175 = vmatpush.msra.mxu0 %v25_v29  ;;  %v37_v47 = vld [vmem:[%s887_s1 + $0xa0] sm:$0xff]  ;;  %v20_v49 = vld [vmem:[%s887_s1 + $0x18] sm:$0xff]  ;;  %v51_v52 = vld [vmem:[%s887_s1 + $0x110] sm:$0xff] }
  0x12   :  { %235 = vmatpush.msra.mxu3 %v73_v30  ;;  %216 = vmatpush.msra.mxu2 %v56_v32  ;;  %v68_v50 = vld [vmem:[%s887_s1 + $0x198] sm:$0xff]  ;;  %v19_v53 = vld [vmem:[%s887_s1 + $0x10] sm:$0xff]  ;;  %v50_v56 = vld [vmem:[%s887_s1 + $0x108] sm:$0xff] }
  0x13   :  { %195 = vmatpush.msra.mxu1 %v41_v31  ;;  %176 = vmatpush.msra.mxu0 %v24_v33  ;;  %v36_v51 = vld [vmem:[%s887_s1 + $0x98] sm:$0xff]  ;;  %v67_v54 = vld [vmem:[%s887_s1 + $0x190] sm:$0xff]  ;;  %v18_v57 = vld [vmem:[%s887_s1 + $0x8] sm:$0xff] }
  0x14   :  { %236 = vmatpush.msra.mxu3 %v72_v34  ;;  %217 = vmatpush.msra.mxu2 %v55_v36  ;;  %v35_v55 = vld [vmem:[%s887_s1 + $0x90] sm:$0xff]  ;;  %v66_v58 = vld [vmem:[%s887_s1 + $0x188] sm:$0xff]  ;;  %v49_v60 = vld [vmem:[%s887_s1 + $0x100] sm:$0xff] }
  0x15   :  { %196 = vmatpush.msra.mxu1 %v40_v35  ;;  %177 = vmatpush.msra.mxu0 %v23_v37  ;;  %v34_v59 = vld [vmem:[%s887_s1 + $0x88] sm:$0xff]  ;;  %v17_v61 = vld [vmem:[%s887_s1] sm:$0xff]  ;;  %v128_v62 = vld [vmem:[%s887_s1 + $0x378] sm:$0xff] }
  0x16   :  { %237 = vmatpush.msra.mxu3 %v71_v38  ;;  %218 = vmatpush.msra.mxu2 %v54_v40  ;;  %v65_v63 = vld [vmem:[%s887_s1 + $0x180] sm:$0xff]  ;;  %v96_v0 = vld [vmem:[%s887_s1 + $0x278] sm:$0xff]  ;;  %v127_v2 = vld [vmem:[%s887_s1 + $0x370] sm:$0xff] }
  0x17   :  { %197 = vmatpush.msra.mxu1 %v39_v39  ;;  %178 = vmatpush.msra.mxu0 %v22_v41  ;;  %v144_v1 = vld [vmem:[%s887_s1 + $0x3f8] sm:$0xff]  ;;  %v33_v3 = vld [vmem:[%s887_s1 + $0x80] sm:$0xff]  ;;  %v95_v4 = vld [vmem:[%s887_s1 + $0x270] sm:$0xff] }
  0x18   :  { %238 = vmatpush.msra.mxu3 %v70_v42  ;;  %219 = vmatpush.msra.mxu2 %v53_v44  ;;  %v112_v5 = vld [vmem:[%s887_s1 + $0x2f8] sm:$0xff]  ;;  %v126_v6 = vld [vmem:[%s887_s1 + $0x368] sm:$0xff]  ;;  %v143_v7 = vld [vmem:[%s887_s1 + $0x3f0] sm:$0xff] }
  0x19   :  { %198 = vmatpush.msra.mxu1 %v38_v43  ;;  %179 = vmatpush.msra.mxu0 %v21_v45  ;;  %v94_v8 = vld [vmem:[%s887_s1 + $0x268] sm:$0xff]  ;;  %v111_v9 = vld [vmem:[%s887_s1 + $0x2f0] sm:$0xff]  ;;  %v125_v10 = vld [vmem:[%s887_s1 + $0x360] sm:$0xff] }
  0x1a   :  { %239 = vmatpush.msra.mxu3 %v69_v46  ;;  %220 = vmatpush.msra.mxu2 %v52_v48  ;;  %v142_v11 = vld [vmem:[%s887_s1 + $0x3e8] sm:$0xff]  ;;  %v93_v12 = vld [vmem:[%s887_s1 + $0x260] sm:$0xff]  ;;  %v124_v15 = vld [vmem:[%s887_s1 + $0x358] sm:$0xff] }
  0x1b   :  { %199 = vmatpush.msra.mxu1 %v37_v47  ;;  %180 = vmatpush.msra.mxu0 %v20_v49  ;;  %v110_v13 = vld [vmem:[%s887_s1 + $0x2e8] sm:$0xff]  ;;  %v15_v14 = vld [vmem:[%s886_s0] sm:$0xff]  ;;  %v92_v17 = vld [vmem:[%s887_s1 + $0x258] sm:$0xff] }
  0x1c   :  { %240 = vmatpush.msra.mxu3 %v68_v50  ;;  %221 = vmatpush.msra.mxu2 %v51_v52  ;;  %v141_v16 = vld [vmem:[%s887_s1 + $0x3e0] sm:$0xff]  ;;  %149 = vst [vmem:[#allocation1] ss:$4 sm:$0xff] %v15_v14  ;;  %v123_v19 = vld [vmem:[%s887_s1 + $0x350] sm:$0xff]  ;;  %v140_v20 = vld [vmem:[%s887_s1 + $0x3d8] sm:$0xff] }
  0x1d   :  { %200 = vmatpush.msra.mxu1 %v36_v51  ;;  %181 = vmatpush.msra.mxu0 %v19_v53  ;;  %v109_v18 = vld [vmem:[%s887_s1 + $0x2e0] sm:$0xff]  ;;  %v91_v21 = vld [vmem:[%s887_s1 + $0x250] sm:$0xff]  ;;  %v108_v22 = vld [vmem:[%s887_s1 + $0x2d8] sm:$0xff] }
  0x1e   :  { %241 = vmatpush.msra.mxu3 %v67_v54  ;;  %222 = vmatpush.msra.mxu2 %v50_v56  ;;  %v122_v23 = vld [vmem:[%s887_s1 + $0x348] sm:$0xff]  ;;  %v139_v24 = vld [vmem:[%s887_s1 + $0x3d0] sm:$0xff]  ;;  %v121_v28 = vld [vmem:[%s887_s1 + $0x340] sm:$0xff] }
  0x1f   :  { %201 = vmatpush.msra.mxu1 %v35_v55  ;;  %182 = vmatpush.msra.mxu0 %v18_v57  ;;  %v16_v25 = vld [vmem:[%s886_s0 + $0x8] sm:$0xff]  ;;  %v107_v27 = vld [vmem:[%s887_s1 + $0x2d0] sm:$0xff]  ;;  %v89_v30 = vld [vmem:[%s887_s1 + $0x240] sm:$0xff] }
  0x20   :  { %242 = vmatpush.msra.mxu3 %v66_v58  ;;  %223 = vmatpush.msra.mxu2 %v49_v60  ;;  %v90_v26 = vld [vmem:[%s887_s1 + $0x248] sm:$0xff]  ;;  %151 = vst [vmem:[#allocation1 + $0x20] ss:$4 sm:$0xff] %v16_v25  ;;  %v120_v32 = vld [vmem:[%s887_s1 + $0x338] sm:$0xff]  ;;  %v137_v33 = vld [vmem:[%s887_s1 + $0x3c0] sm:$0xff] }
  0x21   :  { %202 = vmatpush.msra.mxu1 %v34_v59  ;;  %183 = vmatpush.msra.mxu0 %v17_v61  ;;  %v138_v29 = vld [vmem:[%s887_s1 + $0x3c8] sm:$0xff]  ;;  %v88_v34 = vld [vmem:[%s887_s1 + $0x238] sm:$0xff]  ;;  %v105_v35 = vld [vmem:[%s887_s1 + $0x2c0] sm:$0xff] }
  0x22   :  { %288 = vmatpush.msrb.mxu2 %v128_v62  ;;  %243 = vmatpush.msra.mxu3 %v65_v63  ;;  %v106_v31 = vld [vmem:[%s887_s1 + $0x2c8] sm:$0xff] }
  0x23   :  { %248 = vmatpush.msrb.mxu0 %v96_v0  ;;  %203 = vmatpush.msra.mxu1 %v33_v3 }
  0x24   :  { %308 = vmatpush.msrb.mxu3 %v144_v1  ;;  %289 = vmatpush.msrb.mxu2 %v127_v2 }
  0x25   :  { %249 = vmatpush.msrb.mxu0 %v95_v4  ;;  %268 = vmatpush.msrb.mxu1 %v112_v5 }
  0x26   :  { %290 = vmatpush.msrb.mxu2 %v126_v6  ;;  %309 = vmatpush.msrb.mxu3 %v143_v7 }
  0x27   :  { %250 = vmatpush.msrb.mxu0 %v94_v8  ;;  %269 = vmatpush.msrb.mxu1 %v111_v9 }
  0x28   :  { %291 = vmatpush.msrb.mxu2 %v125_v10  ;;  %310 = vmatpush.msrb.mxu3 %v142_v11 }
  0x29   :  { %251 = vmatpush.msrb.mxu0 %v93_v12  ;;  %270 = vmatpush.msrb.mxu1 %v110_v13 }
  0x2a   :  { %292 = vmatpush.msrb.mxu2 %v124_v15  ;;  %311 = vmatpush.msrb.mxu3 %v141_v16 }
  0x2b   :  { %252 = vmatpush.msrb.mxu0 %v92_v17  ;;  %271 = vmatpush.msrb.mxu1 %v109_v18 }
  0x2c   :  { %293 = vmatpush.msrb.mxu2 %v123_v19  ;;  %312 = vmatpush.msrb.mxu3 %v140_v20 }
  0x2d   :  { %253 = vmatpush.msrb.mxu0 %v91_v21  ;;  %272 = vmatpush.msrb.mxu1 %v108_v22 }
  0x2e   :  { %294 = vmatpush.msrb.mxu2 %v122_v23  ;;  %313 = vmatpush.msrb.mxu3 %v139_v24 }
  0x2f   :  { %254 = vmatpush.msrb.mxu0 %v90_v26  ;;  %273 = vmatpush.msrb.mxu1 %v107_v27 }
  0x30   :  { %295 = vmatpush.msrb.mxu2 %v121_v28  ;;  %314 = vmatpush.msrb.mxu3 %v138_v29 }
  0x31   :  { %8 = vsyncpa [#allocation3], 0  ;;  %255 = vmatpush.msrb.mxu0 %v89_v30  ;;  %274 = vmatpush.msrb.mxu1 %v106_v31  ;;  %v119_v36 = vld [vmem:[%s887_s1 + $0x330] sm:$0xff]  ;;  %v136_v37 = vld [vmem:[%s887_s1 + $0x3b8] sm:$0xff]  ;;  %vm335_vm0 = vcmask 261120   ;;  %s439_s19 = smov [#allocation2]  }
  0x32   :  { %296 = vmatpush.msrb.mxu2 %v120_v32  ;;  %315 = vmatpush.msrb.mxu3 %v137_v33  ;;  %v87_v38 = vld [vmem:[%s887_s1 + $0x230] sm:$0xff]  ;;  %v104_v39 = vld [vmem:[%s887_s1 + $0x2b8] sm:$0xff]  ;;  %v118_v40 = vld [vmem:[%s887_s1 + $0x328] sm:$0xff]  ;;  %s396_s20 = sshll.u32 %s439_s19, 4  ;;  %s398_s23 = sshll.u32 %s889_s3, 4  ;;  %vm389_vm1 = vcmask 58368   ;;  %s397_s20 = int_to_ptr.vmem [resolvable:$true] %s396_s20  ;;  %s399_s23 = int_to_ptr.hbm [resolvable:$true] %s398_s23 }
  0x33   :  { %256 = vmatpush.msrb.mxu0 %v88_v34  ;;  %275 = vmatpush.msrb.mxu1 %v105_v35  ;;  %v135_v41 = vld [vmem:[%s887_s1 + $0x3b0] sm:$0xff]  ;;  %v86_v42 = vld [vmem:[%s887_s1 + $0x228] sm:$0xff]  ;;  %v117_v44 = vld [vmem:[%s887_s1 + $0x320] sm:$0xff] }
  0x34   :  { %297 = vmatpush.msrb.mxu2 %v119_v36  ;;  %316 = vmatpush.msrb.mxu3 %v136_v37  ;;  %v103_v43 = vld [vmem:[%s887_s1 + $0x2b0] sm:$0xff]  ;;  %v134_v45 = vld [vmem:[%s887_s1 + $0x3a8] sm:$0xff]  ;;  %v85_v47 = vld [vmem:[%s887_s1 + $0x220] sm:$0xff] }
  0x35   :  { %257 = vmatpush.msrb.mxu0 %v87_v38  ;;  %276 = vmatpush.msrb.mxu1 %v104_v39  ;;  %v154_v46 = vld.sshfl [vmem:[#allocation1 + $0x10] sm:$0xff pattern:$0x73625140]  ;;  %v102_v48 = vld [vmem:[%s887_s1 + $0x2a8] sm:$0xff]  ;;  %v116_v49 = vld [vmem:[%s887_s1 + $0x318] sm:$0xff] }
  0x36   :  { %298 = vmatpush.msrb.mxu2 %v118_v40  ;;  %317 = vmatpush.msrb.mxu3 %v135_v41  ;;  %v133_v50 = vld [vmem:[%s887_s1 + $0x3a0] sm:$0xff]  ;;  %v155_v52 = vld.sshfl [vmem:[#allocation1 + $0x18] sm:$0xff pattern:$0x73625140]  ;;  %v115_v55 = vld [vmem:[%s887_s1 + $0x310] sm:$0xff] }
  0x37   :  { %258 = vmatpush.msrb.mxu0 %v86_v42  ;;  %277 = vmatpush.msrb.mxu1 %v103_v43  ;;  %v152_v51 = vld.sshfl [vmem:[#allocation1] sm:$0xff pattern:$0x73625140]  ;;  %v84_v53 = vld [vmem:[%s887_s1 + $0x218] sm:$0xff]  ;;  %v83_v58 = vld [vmem:[%s887_s1 + $0x210] sm:$0xff] }
  0x38   :  { %299 = vmatpush.msrb.mxu2 %v117_v44  ;;  %318 = vmatpush.msrb.mxu3 %v134_v45  ;;  %v101_v54 = vld [vmem:[%s887_s1 + $0x2a0] sm:$0xff]  ;;  %v132_v56 = vld [vmem:[%s887_s1 + $0x398] sm:$0xff]  ;;  %v153_v57 = vld.sshfl [vmem:[#allocation1 + $0x8] sm:$0xff pattern:$0x73625140] }
  0x39   :  { %224 = vmatmul.f32.vlgmr.msra.gmra.mxu2 %v154_v46  ;;  %259 = vmatpush.msrb.mxu0 %v85_v47  ;;  %v100_v59 = vld [vmem:[%s887_s1 + $0x298] sm:$0xff]  ;;  %v114_v60 = vld [vmem:[%s887_s1 + $0x308] sm:$0xff]  ;;  %v131_v61 = vld [vmem:[%s887_s1 + $0x390] sm:$0xff] }
  0x3a   :  { %278 = vmatpush.msrb.mxu1 %v102_v48  ;;  %300 = vmatpush.msrb.mxu2 %v116_v49  ;;  %v82_v62 = vld [vmem:[%s887_s1 + $0x208] sm:$0xff]  ;;  %v99_v63 = vld [vmem:[%s887_s1 + $0x290] sm:$0xff]  ;;  %v113_v0 = vld [vmem:[%s887_s1 + $0x300] sm:$0xff] }
  0x3b   :  { %319 = vmatpush.msrb.mxu3 %v133_v50  ;;  %184 = vmatmul.f32.vlgmr.msra.gmra.mxu0 %v152_v51  ;;  %v130_v1 = vld [vmem:[%s887_s1 + $0x388] sm:$0xff]  ;;  %v158_v2 = vld.sshfl [vmem:[#allocation1 + $0x30] sm:$0xff pattern:$0x73625140]  ;;  %v81_v3 = vld [vmem:[%s887_s1 + $0x200] sm:$0xff] }
  0x3c   :  { %244 = vmatmul.f32.vlgmr.msra.gmra.mxu3 %v155_v52  ;;  %260 = vmatpush.msrb.mxu0 %v84_v53  ;;  %v98_v4 = vld [vmem:[%s887_s1 + $0x288] sm:$0xff]  ;;  %v129_v5 = vld [vmem:[%s887_s1 + $0x380] sm:$0xff]  ;;  %v159_v7 = vld.sshfl [vmem:[#allocation1 + $0x38] sm:$0xff pattern:$0x73625140] }
  0x3d   :  { %279 = vmatpush.msrb.mxu1 %v101_v54  ;;  %301 = vmatpush.msrb.mxu2 %v115_v55  ;;  %v156_v6 = vld.sshfl [vmem:[#allocation1 + $0x20] sm:$0xff pattern:$0x73625140]  ;;  %v157_v9 = vld.sshfl [vmem:[#allocation1 + $0x28] sm:$0xff pattern:$0x73625140] }
  0x3e   :  { %320 = vmatpush.msrb.mxu3 %v132_v56  ;;  %204 = vmatmul.f32.vlgmr.msra.gmra.mxu1 %v153_v57  ;;  %v97_v8 = vld [vmem:[%s887_s1 + $0x280] sm:$0xff]  ;;  %v332_v10 = vld [vmem:[%s888_s2 + $0x18] sm:$0xff]  ;;  %v331_v11 = vld [vmem:[%s888_s2 + $0x10] sm:$0xff] }
  0x3f   :  { %261 = vmatpush.msrb.mxu0 %v83_v58  ;;  %280 = vmatpush.msrb.mxu1 %v100_v59  ;;  %v330_v12 = vld [vmem:[%s888_s2 + $0x8] sm:$0xff]  ;;  %v329_v13 = vld [vmem:[%s888_s2] sm:$0xff]  ;;  %v363_v14 = vld [vmem:[%s888_s2 + $0x38] sm:$0xff] }
  0x40   :  { %302 = vmatpush.msrb.mxu2 %v114_v60  ;;  %321 = vmatpush.msrb.mxu3 %v131_v61  ;;  %v362_v15 = vld [vmem:[%s888_s2 + $0x30] sm:$0xff]  ;;  %v410_v16 = vld [vmem:[%s888_s2 + $0x40] ss:$0 sm:$0xff]  ;;  %v361_v34 = vld [vmem:[%s888_s2 + $0x28] sm:$0xff] }
  0x41   :  { %262 = vmatpush.msrb.mxu0 %v82_v62  ;;  %281 = vmatpush.msrb.mxu1 %v99_v63  ;;  %v360_v35 = vld [vmem:[%s888_s2 + $0x20] sm:$0xff] }
  0x42   :  { %303 = vmatpush.msrb.mxu2 %v113_v0  ;;  %322 = vmatpush.msrb.mxu3 %v130_v1  ;;  %v411_v36 = vld [vmem:[%s888_s2 + $0x41] ss:$0 sm:$0xff]  ;;  %v412_v40 = vld [vmem:[%s888_s2 + $0x42] ss:$0 sm:$0xff] }
  0x43   :  { %304 = vmatmul.f32.vlgmr.msrb.gmra.mxu2 %v158_v2  ;;  %263 = vmatpush.msrb.mxu0 %v81_v3 }
  0x44   :  { %282 = vmatpush.msrb.mxu1 %v98_v4  ;;  %323 = vmatpush.msrb.mxu3 %v129_v5 }
  0x45   :  { %264 = vmatmul.f32.vlgmr.msrb.gmra.mxu0 %v156_v6  ;;  %324 = vmatmul.f32.vlgmr.msrb.gmra.mxu3 %v159_v7 }
  0x46   :  { %283 = vmatpush.msrb.mxu1 %v97_v8  ;;  %351 = vmatpush.msra.mxu0 %v332_v10 }
  0x47   :  { %284 = vmatmul.f32.vlgmr.msrb.gmra.mxu1 %v157_v9 }
  0x48   :  { %352 = vmatpush.msra.mxu0 %v331_v11  ;;  %381 = vmatpush.msra.mxu1 %v363_v14 }
  0x4a   :  { %353 = vmatpush.msra.mxu0 %v330_v12  ;;  %382 = vmatpush.msra.mxu1 %v362_v15 }
  0x4c   :  { %354 = vmatpush.msra.mxu0 %v329_v13  ;;  %383 = vmatpush.msra.mxu1 %v361_v34 }
  0x4e   :  { %384 = vmatpush.msra.mxu1 %v360_v35 }
  0xb8   :  { %v185_v17 = vpop.f32.mrf.mxu0 }
  0xb9   :  { %v186_v18 = vadd.f32 %v410_v16, %v185_v17 }
  0xbb   :  { %v205_v19 = vpop.f32.mrf.mxu1 }
  0xbc   :  { %v206_v20 = vadd.f32 %v205_v19, %v186_v18  ;;  %v225_v21 = vpop.f32.mrf.mxu2 }
  0xbe   :  { %v226_v22 = vadd.f32 %v225_v21, %v206_v20 }
  0xbf   :  { %v245_v23 = vpop.f32.mrf.mxu3 }
  0xc0   :  { %v246_v24 = vadd.f32 %v245_v23, %v226_v22 }
  0xc2   :  { %v265_v25 = vpop.f32.mrf.mxu0 }
  0xc3   :  { %v266_v26 = vadd.f32 %v265_v25, %v246_v24 }
  0xc4   :  { %v285_v27 = vpop.f32.mrf.mxu1 }
  0xc5   :  { %v286_v28 = vadd.f32 %v285_v27, %v266_v26 }
  0xc6   :  { %v305_v29 = vpop.f32.mrf.mxu2 }
  0xc7   :  { %v306_v30 = vadd.f32 %v305_v29, %v286_v28 }
  0xc8   :  { %v325_v31 = vpop.f32.mrf.mxu3 }
  0xc9   :  { %v326_v32 = vadd.f32 %v325_v31, %v306_v30 }
  0xcb   :  { %v328_v33 = vmax.f32 %v326_v32, 0.0 }
  0xcd   :  { %407 = vmatmul.msk.f32.vlgmr.msra.gmra.mxu0 %vm335_vm0, %v328_v33 }
 0x14a   :  { %v356_v37 = vpop.f32.mrf.mxu0 }
 0x14b   :  { %v357_v38 = vadd.f32 %v411_v36, %v356_v37 }
 0x14d   :  { %v359_v39 = vmax.f32 %v357_v38, 0.0 }
 0x14f   :  { %408 = vmatmul.msk.f32.vlgmr.msra.gmra.mxu1 %vm335_vm0, %v359_v39 }
 0x1cc   :  { %v386_v41 = vpop.f32.mrf.mxu1 }
 0x1cd   :  { %v387_v42 = vadd.f32 %v412_v40, %v386_v41 }
 0x1cf   :  { %390 = vst.msk [vmem:[#allocation2] sm:$0x3] %vm389_vm1, %v387_v42 }
 0x1d0   :  { %401 = dma.vmem_to_hbm [thread:$0]  %s397_s20, 32, %s399_s23, [#allocation3]  }
 0x1d1   :  { %437 = dma.done.wait [#allocation3], 32  }
 0x1d2   :  { %438 = vsyncadd [#allocation3], 4294967264 }
 0x1d3   :  { %406 = vsyncpa [#allocation3], 1 }

</bundles_post_ra>
